<compile_context>
chip_gen: v7x
topology: tpu7x:2x2x1
jax: 0.10.0
libtpu: 0.0.40
codegen_flags: <defaults>
</compile_context>

<pallas_src>
import functools

import jax
import jax.numpy as jnp
from jax.experimental import pallas as pl
from jax.experimental.pallas import tpu as pltpu


def _conv_block_kernel(x_ref, m_ref, w1_ref, w2_ref, o_ref, *, H, W):
    """Fused (conv3x3 SAME + InstanceNorm + ReLU) x 2 for one batch block.

    x_ref : (NB, Cin, H*W)   input, channels on sublanes, flat spatial on lanes
    m_ref : (9, H*W)         per-tap boundary masks (precomputed, resident)
    w1_ref: (Cout, 9*Cin)    conv1 weight packed tap-major / channel-minor
    w2_ref: (Cout, 9*Cout)   conv2 weight packed the same way
    o_ref : (NB, Cout, H*W)  output
    """
    HW = H * W
    inv_hw = 1.0 / HW

    def build_patches(inp):
        # inp: (C, HW) -> (9*C, HW) im2col slab; tap-major, channel-minor rows.
        parts = []
        for k in range(9):
            dy, dx = k // 3 - 1, k % 3 - 1
            shift = (-(dy * W + dx)) % HW      # out[p] = in[p + dy*W + dx]
            p = pltpu.roll(inp, shift, axis=1) if shift else inp
            if k != 4:                         # center tap mask is all-ones
                p = p * m_ref[k:k + 1, :]      # zero wrapped (out-of-image) lanes
            parts.append(p)
        return jnp.concatenate(parts, axis=0)

    def conv_in_relu(inp, w_packed):
        # Single im2col MXU matmul: (Cout, 9*C) @ (9*C, HW).
        acc = jnp.dot(w_packed, build_patches(inp),
                      preferred_element_type=jnp.float32)
        # (Conv bias omitted: exactly cancelled by the InstanceNorm mean.)
        # InstanceNorm2d (affine=False, eps=1e-5): per-channel lane reduction.
        s1 = jnp.sum(acc, axis=1, keepdims=True)
        s2 = jnp.sum(acc * acc, axis=1, keepdims=True)
        mean = s1 * inv_hw
        var = s2 * inv_hw - mean * mean
        y = (acc - mean) * jax.lax.rsqrt(var + 1e-5)
        # ReLU (Dropout2d == identity in eval / drop_prob == 0).
        return jnp.maximum(y, 0.0)

    w1 = w1_ref[...]
    w2 = w2_ref[...]
    for b in range(x_ref.shape[0]):            # statically unrolled batch block
        h = conv_in_relu(x_ref[b].astype(jnp.float32), w1)  # stage 1: stays in VMEM
        o_ref[b] = conv_in_relu(h, w2).astype(o_ref.dtype)  # stage 2


def _tap_masks(H, W):
    """(9, H*W) f32 validity masks for the 3x3 SAME-padding taps."""
    HW = H * W
    pos = jnp.arange(HW, dtype=jnp.int32)
    y, x = pos // W, pos % W
    rows = []
    for k in range(9):
        dy, dx = k // 3 - 1, k % 3 - 1
        valid = jnp.ones((HW,), dtype=bool)
        if dy < 0:
            valid = valid & (y >= -dy)
        if dy > 0:
            valid = valid & (y < H - dy)
        if dx < 0:
            valid = valid & (x >= -dx)
        if dx > 0:
            valid = valid & (x < W - dx)
        rows.append(valid.astype(jnp.float32))
    return jnp.stack(rows, axis=0)


def conv_block_forward(x, w1, b1, w2, b2, *, batch_block=1):
    """ConvBlock.forward.

    x : (N, Cin, H, W)   NCHW (PyTorch layout)
    w*: (Cout, *, 3, 3)  OIHW (PyTorch Conv2d layout),  b*: (Cout,)
    Returns (N, Cout, H, W).
    """
    N, Cin, H, W = x.shape
    Cout = w1.shape[0]
    HW = H * W
    del b1, b2  # conv bias is exactly cancelled by the InstanceNorm mean subtract

    x_flat = x.reshape(N, Cin, HW)                                   # free reshape
    # OIHW -> (Cout, 9*Cin): tap-major / channel-minor columns, matching the
    # kernel's im2col row order.
    w1_p = jnp.transpose(w1, (0, 2, 3, 1)).reshape(Cout, 9 * Cin)
    w2_p = jnp.transpose(w2, (0, 2, 3, 1)).reshape(Cout, 9 * Cout)
    masks = _tap_masks(H, W)

    nb = batch_block
    assert N % nb == 0, (N, nb)

    kernel = functools.partial(_conv_block_kernel, H=H, W=W)
    out = pl.pallas_call(
        kernel,
        out_shape=jax.ShapeDtypeStruct((N, Cout, HW), x.dtype),
        grid_spec=pltpu.PrefetchScalarGridSpec(
            num_scalar_prefetch=0,
            grid=(N // nb,),
            in_specs=[
                pl.BlockSpec((nb, Cin, HW), lambda n: (n, 0, 0)),
                pl.BlockSpec((9, HW), lambda n: (0, 0)),          # resident masks
                pl.BlockSpec((Cout, 9 * Cin), lambda n: (0, 0)),  # resident weights
                pl.BlockSpec((Cout, 9 * Cout), lambda n: (0, 0)),
            ],
            out_specs=pl.BlockSpec((nb, Cout, HW), lambda n: (n, 0, 0)),
        ),
        compiler_params=pltpu.CompilerParams(
            dimension_semantics=("parallel",)),   # keeps both v7x TCs busy (N=2)
    )(x_flat, masks, w1_p, w2_p)
    return out.reshape(N, Cout, H, W)


def _reference_forward(x, w1, b1, w2, b2):
    """Pure-JAX reference (lax conv, NCHW/OIHW) to validate the Pallas kernel."""
    def stage(x, w, b):
        y = jax.lax.conv_general_dilated(
            x, w, window_strides=(1, 1), padding="SAME",
            dimension_numbers=("NCHW", "OIHW", "NCHW"))
        y = y + b[None, :, None, None]
        mean = jnp.mean(y, axis=(2, 3), keepdims=True)
        var = jnp.mean((y - mean) ** 2, axis=(2, 3), keepdims=True)
        y = (y - mean) * jax.lax.rsqrt(var + 1e-5)
        return jnp.maximum(y, 0.0)
    return stage(stage(x, w1, b1), w2, b2)


if __name__ == "__main__":
    # Shapes consistent with ConvBlock(in_chans=4, out_chans=8, drop_prob=0.0)
    N, Cin, Cout, H, W = 2, 4, 8, 16, 16

    key = jax.random.PRNGKey(0)
    k_x, k_w1, k_b1, k_w2, k_b2 = jax.random.split(key, 5)

    x = jax.random.normal(k_x, (N, Cin, H, W), dtype=jnp.float32)
    # Conv weights in PyTorch OIHW layout; deterministic init.
    w1 = jax.random.normal(k_w1, (Cout, Cin, 3, 3), dtype=jnp.float32) * 0.1
    b1 = jax.random.normal(k_b1, (Cout,), dtype=jnp.float32) * 0.1
    w2 = jax.random.normal(k_w2, (Cout, Cout, 3, 3), dtype=jnp.float32) * 0.1
    b2 = jax.random.normal(k_b2, (Cout,), dtype=jnp.float32) * 0.1

    out = jax.jit(conv_block_forward)(x, w1, b1, w2, b2)
    out = jax.block_until_ready(out)

    ref = _reference_forward(x, w1, b1, w2, b2)
    assert out.shape == (N, Cout, H, W), out.shape
    assert jnp.allclose(out, ref, atol=2e-4, rtol=2e-4), (
        float(jnp.max(jnp.abs(out - ref))))

    print("KERNEL_OK")
</pallas_src>

<mosaic_0001>
module attributes {stable_mosaic.version = 11 : i64} {
  func.func @_conv_block_kernel(%arg0: i32, %arg1: memref<1x4x256xf32, #tpu.memory_space<vmem>>, %arg2: memref<9x256xf32, #tpu.memory_space<vmem>>, %arg3: memref<8x36xf32, #tpu.memory_space<vmem>>, %arg4: memref<8x72xf32, #tpu.memory_space<vmem>>, %arg5: memref<1x8x256xf32, #tpu.memory_space<vmem>>) attributes {dimension_semantics = [#tpu.dimension_semantics<parallel>], iteration_bounds = array<i64: 2>, scalar_prefetch = 0 : i64, scratch_operands = 0 : i64, tpu.core_type = #tpu.core_type<tc>, window_params = [{transform_indices = @transform_0, window_bounds = array<i64: 1, 4, 256>}, {pipeline_mode = #tpu.pipeline_mode<synchronous>, transform_indices = @transform_1, window_bounds = array<i64: 9, 256>}, {pipeline_mode = #tpu.pipeline_mode<synchronous>, transform_indices = @transform_2, window_bounds = array<i64: 8, 36>}, {pipeline_mode = #tpu.pipeline_mode<synchronous>, transform_indices = @transform_3, window_bounds = array<i64: 8, 72>}, {transform_indices = @transform_4, window_bounds = array<i64: 1, 8, 256>}]} {
    %c0 = arith.constant 0 : index
    %c0_0 = arith.constant 0 : index
    %0 = vector.load %arg3[%c0, %c0_0] : memref<8x36xf32, #tpu.memory_space<vmem>>, vector<8x36xf32>
    %c0_1 = arith.constant 0 : index
    %c0_2 = arith.constant 0 : index
    %1 = vector.load %arg4[%c0_1, %c0_2] : memref<8x72xf32, #tpu.memory_space<vmem>>, vector<8x72xf32>
    %c0_3 = arith.constant 0 : index
    %c0_4 = arith.constant 0 : index
    %c0_5 = arith.constant 0 : index
    %2 = vector.load %arg1[%c0_3, %c0_4, %c0_5] : memref<1x4x256xf32, #tpu.memory_space<vmem>>, vector<1x4x256xf32>
    %3 = vector.shape_cast %2 : vector<1x4x256xf32> to vector<4x256xf32>
    %c17_i32 = arith.constant 17 : i32
    %4 = tpu.dynamic_rotate %3 by %c17_i32 dim 1 : vector<4x256xf32>, i32 -> vector<4x256xf32>
    %c0_6 = arith.constant 0 : index
    %c0_7 = arith.constant 0 : index
    %5 = vector.load %arg2[%c0_6, %c0_7] : memref<9x256xf32, #tpu.memory_space<vmem>>, vector<1x256xf32>
    %6 = vector.broadcast %5 : vector<1x256xf32> to vector<4x256xf32>
    %7 = arith.mulf %4, %6 : vector<4x256xf32>
    %c16_i32 = arith.constant 16 : i32
    %8 = tpu.dynamic_rotate %3 by %c16_i32 dim 1 : vector<4x256xf32>, i32 -> vector<4x256xf32>
    %c1 = arith.constant 1 : index
    %c0_8 = arith.constant 0 : index
    %9 = vector.load %arg2[%c1, %c0_8] : memref<9x256xf32, #tpu.memory_space<vmem>>, vector<1x256xf32>
    %10 = vector.broadcast %9 : vector<1x256xf32> to vector<4x256xf32>
    %11 = arith.mulf %8, %10 : vector<4x256xf32>
    %c15_i32 = arith.constant 15 : i32
    %12 = tpu.dynamic_rotate %3 by %c15_i32 dim 1 : vector<4x256xf32>, i32 -> vector<4x256xf32>
    %c2 = arith.constant 2 : index
    %c0_9 = arith.constant 0 : index
    %13 = vector.load %arg2[%c2, %c0_9] : memref<9x256xf32, #tpu.memory_space<vmem>>, vector<1x256xf32>
    %14 = vector.broadcast %13 : vector<1x256xf32> to vector<4x256xf32>
    %15 = arith.mulf %12, %14 : vector<4x256xf32>
    %c1_i32 = arith.constant 1 : i32
    %16 = tpu.dynamic_rotate %3 by %c1_i32 dim 1 : vector<4x256xf32>, i32 -> vector<4x256xf32>
    %c3 = arith.constant 3 : index
    %c0_10 = arith.constant 0 : index
    %17 = vector.load %arg2[%c3, %c0_10] : memref<9x256xf32, #tpu.memory_space<vmem>>, vector<1x256xf32>
    %18 = vector.broadcast %17 : vector<1x256xf32> to vector<4x256xf32>
    %19 = arith.mulf %16, %18 : vector<4x256xf32>
    %c255_i32 = arith.constant 255 : i32
    %20 = tpu.dynamic_rotate %3 by %c255_i32 dim 1 : vector<4x256xf32>, i32 -> vector<4x256xf32>
    %c5 = arith.constant 5 : index
    %c0_11 = arith.constant 0 : index
    %21 = vector.load %arg2[%c5, %c0_11] : memref<9x256xf32, #tpu.memory_space<vmem>>, vector<1x256xf32>
    %22 = vector.broadcast %21 : vector<1x256xf32> to vector<4x256xf32>
    %23 = arith.mulf %20, %22 : vector<4x256xf32>
    %c241_i32 = arith.constant 241 : i32
    %24 = tpu.dynamic_rotate %3 by %c241_i32 dim 1 : vector<4x256xf32>, i32 -> vector<4x256xf32>
    %c6 = arith.constant 6 : index
    %c0_12 = arith.constant 0 : index
    %25 = vector.load %arg2[%c6, %c0_12] : memref<9x256xf32, #tpu.memory_space<vmem>>, vector<1x256xf32>
    %26 = vector.broadcast %25 : vector<1x256xf32> to vector<4x256xf32>
    %27 = arith.mulf %24, %26 : vector<4x256xf32>
    %c240_i32 = arith.constant 240 : i32
    %28 = tpu.dynamic_rotate %3 by %c240_i32 dim 1 : vector<4x256xf32>, i32 -> vector<4x256xf32>
    %c7 = arith.constant 7 : index
    %c0_13 = arith.constant 0 : index
    %29 = vector.load %arg2[%c7, %c0_13] : memref<9x256xf32, #tpu.memory_space<vmem>>, vector<1x256xf32>
    %30 = vector.broadcast %29 : vector<1x256xf32> to vector<4x256xf32>
    %31 = arith.mulf %28, %30 : vector<4x256xf32>
    %c239_i32 = arith.constant 239 : i32
    %32 = tpu.dynamic_rotate %3 by %c239_i32 dim 1 : vector<4x256xf32>, i32 -> vector<4x256xf32>
    %c8 = arith.constant 8 : index
    %c0_14 = arith.constant 0 : index
    %33 = vector.load %arg2[%c8, %c0_14] : memref<9x256xf32, #tpu.memory_space<vmem>>, vector<1x256xf32>
    %34 = vector.broadcast %33 : vector<1x256xf32> to vector<4x256xf32>
    %35 = arith.mulf %32, %34 : vector<4x256xf32>
    %36 = tpu.concatenate %7, %11, %15, %19, %3, %23, %27, %31, %35 in 0 : vector<4x256xf32>, vector<4x256xf32>, vector<4x256xf32>, vector<4x256xf32>, vector<4x256xf32>, vector<4x256xf32>, vector<4x256xf32>, vector<4x256xf32>, vector<4x256xf32> -> vector<36x256xf32>
    %cst = arith.constant dense<0.000000e+00> : vector<8x256xf32>
    %37 = tpu.matmul %0, %36, %cst {dimension_numbers = #tpu.dot_dimension_numbers<[1], [0], [0], [1], [0, 0, 1, 1], [], []>} : vector<8x36xf32>, vector<36x256xf32>, vector<8x256xf32> -> vector<8x256xf32>
    %cst_15 = arith.constant dense<0.000000e+00> : vector<8xf32>
    %38 = vector.multi_reduction <add>, %37, %cst_15 [1] : vector<8x256xf32> to vector<8xf32>
    %39 = vector.shape_cast %38 : vector<8xf32> to vector<8x1xf32>
    %40 = arith.mulf %37, %37 : vector<8x256xf32>
    %cst_16 = arith.constant dense<0.000000e+00> : vector<8xf32>
    %41 = vector.multi_reduction <add>, %40, %cst_16 [1] : vector<8x256xf32> to vector<8xf32>
    %42 = vector.shape_cast %41 : vector<8xf32> to vector<8x1xf32>
    %cst_17 = arith.constant 3.906250e-03 : f32
    %43 = vector.broadcast %cst_17 : f32 to vector<8x1xf32>
    %44 = arith.mulf %39, %43 : vector<8x1xf32>
    %cst_18 = arith.constant 3.906250e-03 : f32
    %45 = vector.broadcast %cst_18 : f32 to vector<8x1xf32>
    %46 = arith.mulf %42, %45 : vector<8x1xf32>
    %47 = arith.mulf %44, %44 : vector<8x1xf32>
    %48 = arith.subf %46, %47 : vector<8x1xf32>
    %49 = vector.broadcast %44 : vector<8x1xf32> to vector<8x256xf32>
    %50 = arith.subf %37, %49 : vector<8x256xf32>
    %cst_19 = arith.constant 9.99999974E-6 : f32
    %51 = vector.broadcast %cst_19 : f32 to vector<8x1xf32>
    %52 = arith.addf %48, %51 : vector<8x1xf32>
    %53 = math.rsqrt %52 : vector<8x1xf32>
    %54 = vector.broadcast %53 : vector<8x1xf32> to vector<8x256xf32>
    %55 = arith.mulf %50, %54 : vector<8x256xf32>
    %cst_20 = arith.constant 0.000000e+00 : f32
    %56 = vector.broadcast %cst_20 : f32 to vector<8x256xf32>
    %57 = arith.maximumf %55, %56 : vector<8x256xf32>
    %c17_i32_21 = arith.constant 17 : i32
    %58 = tpu.dynamic_rotate %57 by %c17_i32_21 dim 1 : vector<8x256xf32>, i32 -> vector<8x256xf32>
    %c0_22 = arith.constant 0 : index
    %c0_23 = arith.constant 0 : index
    %59 = vector.load %arg2[%c0_22, %c0_23] : memref<9x256xf32, #tpu.memory_space<vmem>>, vector<1x256xf32>
    %60 = vector.broadcast %59 : vector<1x256xf32> to vector<8x256xf32>
    %61 = arith.mulf %58, %60 : vector<8x256xf32>
    %c16_i32_24 = arith.constant 16 : i32
    %62 = tpu.dynamic_rotate %57 by %c16_i32_24 dim 1 : vector<8x256xf32>, i32 -> vector<8x256xf32>
    %c1_25 = arith.constant 1 : index
    %c0_26 = arith.constant 0 : index
    %63 = vector.load %arg2[%c1_25, %c0_26] : memref<9x256xf32, #tpu.memory_space<vmem>>, vector<1x256xf32>
    %64 = vector.broadcast %63 : vector<1x256xf32> to vector<8x256xf32>
    %65 = arith.mulf %62, %64 : vector<8x256xf32>
    %c15_i32_27 = arith.constant 15 : i32
    %66 = tpu.dynamic_rotate %57 by %c15_i32_27 dim 1 : vector<8x256xf32>, i32 -> vector<8x256xf32>
    %c2_28 = arith.constant 2 : index
    %c0_29 = arith.constant 0 : index
    %67 = vector.load %arg2[%c2_28, %c0_29] : memref<9x256xf32, #tpu.memory_space<vmem>>, vector<1x256xf32>
    %68 = vector.broadcast %67 : vector<1x256xf32> to vector<8x256xf32>
    %69 = arith.mulf %66, %68 : vector<8x256xf32>
    %c1_i32_30 = arith.constant 1 : i32
    %70 = tpu.dynamic_rotate %57 by %c1_i32_30 dim 1 : vector<8x256xf32>, i32 -> vector<8x256xf32>
    %c3_31 = arith.constant 3 : index
    %c0_32 = arith.constant 0 : index
    %71 = vector.load %arg2[%c3_31, %c0_32] : memref<9x256xf32, #tpu.memory_space<vmem>>, vector<1x256xf32>
    %72 = vector.broadcast %71 : vector<1x256xf32> to vector<8x256xf32>
    %73 = arith.mulf %70, %72 : vector<8x256xf32>
    %c255_i32_33 = arith.constant 255 : i32
    %74 = tpu.dynamic_rotate %57 by %c255_i32_33 dim 1 : vector<8x256xf32>, i32 -> vector<8x256xf32>
    %c5_34 = arith.constant 5 : index
    %c0_35 = arith.constant 0 : index
    %75 = vector.load %arg2[%c5_34, %c0_35] : memref<9x256xf32, #tpu.memory_space<vmem>>, vector<1x256xf32>
    %76 = vector.broadcast %75 : vector<1x256xf32> to vector<8x256xf32>
    %77 = arith.mulf %74, %76 : vector<8x256xf32>
    %c241_i32_36 = arith.constant 241 : i32
    %78 = tpu.dynamic_rotate %57 by %c241_i32_36 dim 1 : vector<8x256xf32>, i32 -> vector<8x256xf32>
    %c6_37 = arith.constant 6 : index
    %c0_38 = arith.constant 0 : index
    %79 = vector.load %arg2[%c6_37, %c0_38] : memref<9x256xf32, #tpu.memory_space<vmem>>, vector<1x256xf32>
    %80 = vector.broadcast %79 : vector<1x256xf32> to vector<8x256xf32>
    %81 = arith.mulf %78, %80 : vector<8x256xf32>
    %c240_i32_39 = arith.constant 240 : i32
    %82 = tpu.dynamic_rotate %57 by %c240_i32_39 dim 1 : vector<8x256xf32>, i32 -> vector<8x256xf32>
    %c7_40 = arith.constant 7 : index
    %c0_41 = arith.constant 0 : index
    %83 = vector.load %arg2[%c7_40, %c0_41] : memref<9x256xf32, #tpu.memory_space<vmem>>, vector<1x256xf32>
    %84 = vector.broadcast %83 : vector<1x256xf32> to vector<8x256xf32>
    %85 = arith.mulf %82, %84 : vector<8x256xf32>
    %c239_i32_42 = arith.constant 239 : i32
    %86 = tpu.dynamic_rotate %57 by %c239_i32_42 dim 1 : vector<8x256xf32>, i32 -> vector<8x256xf32>
    %c8_43 = arith.constant 8 : index
    %c0_44 = arith.constant 0 : index
    %87 = vector.load %arg2[%c8_43, %c0_44] : memref<9x256xf32, #tpu.memory_space<vmem>>, vector<1x256xf32>
    %88 = vector.broadcast %87 : vector<1x256xf32> to vector<8x256xf32>
    %89 = arith.mulf %86, %88 : vector<8x256xf32>
    %90 = tpu.concatenate %61, %65, %69, %73, %57, %77, %81, %85, %89 in 0 : vector<8x256xf32>, vector<8x256xf32>, vector<8x256xf32>, vector<8x256xf32>, vector<8x256xf32>, vector<8x256xf32>, vector<8x256xf32>, vector<8x256xf32>, vector<8x256xf32> -> vector<72x256xf32>
    %cst_45 = arith.constant dense<0.000000e+00> : vector<8x256xf32>
    %91 = tpu.matmul %1, %90, %cst_45 {dimension_numbers = #tpu.dot_dimension_numbers<[1], [0], [0], [1], [0, 0, 1, 1], [], []>} : vector<8x72xf32>, vector<72x256xf32>, vector<8x256xf32> -> vector<8x256xf32>
    %cst_46 = arith.constant dense<0.000000e+00> : vector<8xf32>
    %92 = vector.multi_reduction <add>, %91, %cst_46 [1] : vector<8x256xf32> to vector<8xf32>
    %93 = vector.shape_cast %92 : vector<8xf32> to vector<8x1xf32>
    %94 = arith.mulf %91, %91 : vector<8x256xf32>
    %cst_47 = arith.constant dense<0.000000e+00> : vector<8xf32>
    %95 = vector.multi_reduction <add>, %94, %cst_47 [1] : vector<8x256xf32> to vector<8xf32>
    %96 = vector.shape_cast %95 : vector<8xf32> to vector<8x1xf32>
    %cst_48 = arith.constant 3.906250e-03 : f32
    %97 = vector.broadcast %cst_48 : f32 to vector<8x1xf32>
    %98 = arith.mulf %93, %97 : vector<8x1xf32>
    %cst_49 = arith.constant 3.906250e-03 : f32
    %99 = vector.broadcast %cst_49 : f32 to vector<8x1xf32>
    %100 = arith.mulf %96, %99 : vector<8x1xf32>
    %101 = arith.mulf %98, %98 : vector<8x1xf32>
    %102 = arith.subf %100, %101 : vector<8x1xf32>
    %103 = vector.broadcast %98 : vector<8x1xf32> to vector<8x256xf32>
    %104 = arith.subf %91, %103 : vector<8x256xf32>
    %cst_50 = arith.constant 9.99999974E-6 : f32
    %105 = vector.broadcast %cst_50 : f32 to vector<8x1xf32>
    %106 = arith.addf %102, %105 : vector<8x1xf32>
    %107 = math.rsqrt %106 : vector<8x1xf32>
    %108 = vector.broadcast %107 : vector<8x1xf32> to vector<8x256xf32>
    %109 = arith.mulf %104, %108 : vector<8x256xf32>
    %cst_51 = arith.constant 0.000000e+00 : f32
    %110 = vector.broadcast %cst_51 : f32 to vector<8x256xf32>
    %111 = arith.maximumf %109, %110 : vector<8x256xf32>
    %c0_52 = arith.constant 0 : index
    %c0_53 = arith.constant 0 : index
    %c0_54 = arith.constant 0 : index
    %112 = vector.load %arg5[%c0_52, %c0_53, %c0_54] : memref<1x8x256xf32, #tpu.memory_space<vmem>>, vector<1x8x256xf32>
    %113 = vector.shape_cast %112 : vector<1x8x256xf32> to vector<8x256xf32>
    %114 = vector.shape_cast %111 : vector<8x256xf32> to vector<1x8x256xf32>
    tpu.vector_store %arg5[%c0_52, %c0_53, %c0_54], %114 {strides = array<i32>} : memref<1x8x256xf32, #tpu.memory_space<vmem>>, vector<1x8x256xf32>,
    return
  }
  func.func @transform_0(%arg0: i32) -> (i32, i32, i32) {
    %c0_i32 = arith.constant 0 : i32
    %c0_i32_0 = arith.constant 0 : i32
    %c0_i32_1 = arith.constant 0 : i32
    return %arg0, %c0_i32, %c0_i32_0 : i32, i32, i32
  }
  func.func @transform_1(%arg0: i32) -> (i32, i32) {
    %c0_i32 = arith.constant 0 : i32
    %c0_i32_0 = arith.constant 0 : i32
    %c0_i32_1 = arith.constant 0 : i32
    return %c0_i32, %c0_i32_0 : i32, i32
  }
  func.func @transform_2(%arg0: i32) -> (i32, i32) {
    %c0_i32 = arith.constant 0 : i32
    %c0_i32_0 = arith.constant 0 : i32
    %c0_i32_1 = arith.constant 0 : i32
    return %c0_i32, %c0_i32_0 : i32, i32
  }
  func.func @transform_3(%arg0: i32) -> (i32, i32) {
    %c0_i32 = arith.constant 0 : i32
    %c0_i32_0 = arith.constant 0 : i32
    %c0_i32_1 = arith.constant 0 : i32
    return %c0_i32, %c0_i32_0 : i32, i32
  }
  func.func @transform_4(%arg0: i32) -> (i32, i32, i32) {
    %c0_i32 = arith.constant 0 : i32
    %c0_i32_0 = arith.constant 0 : i32
    %c0_i32_1 = arith.constant 0 : i32
    return %arg0, %c0_i32, %c0_i32_0 : i32, i32, i32
  }
}

</mosaic_0001>

<bundles_post_ra>
// kernel: conv_block_forward.1
= control target key start
LH: loop header
LB: loop body
LE: loop exit
PB: predicated region body
PF: predicated region fallthrough
CT: control target
= control target key end

     0   :  { %s843_s15 = smov 0   ;;  %s1129_s0 = inlined_call_operand.vmem [shape: f32[2,4,256], index: 0, kind: input, shape index: {}]   ;;  %s1130_s1 = inlined_call_operand.vmem [shape: f32[9,256], index: 1, kind: input, shape index: {}]   ;;  %s1131_s2 = inlined_call_operand.vmem [shape: f32[8,36], index: 2, kind: input, shape index: {}]   ;;  %s1132_s3 = inlined_call_operand.vmem [shape: f32[8,72], index: 3, kind: input, shape index: {}]   ;;  %s1133_s4 = inlined_call_operand.vmem [shape: f32[2,8,256], index: 4, kind: output, shape index: {}]  }
   0x1 LB: > { %s731_s16 = sadd.s32 4294967295, %s807_s15   ;;  %p735_p0 = scmp.ge.s32.totalorder %s807_s15, 1  ;;  %s807_s15 = sphi %s843_s15, %s14_s15  }
   0x2   : > { %p162_p1 = scmp.lt.s32.totalorder %s807_s15, 3 }
   0x4   : > { %p163_p2 = pnand %p735_p0, %p162_p1 }
   0x5   : > { %p188_p3 = scmp.lt.s32.totalorder (!%p163_p2), %s731_s16, 1  ;;  %s809_s21 = smov (!%p163_p2), 1   ;;  %v815_v2 = vmov (!%p163_p2), 0.0   ;;  %v208_v3 = vlaneseq (!%p163_p2)  ;;  %v742_v10 = vld [vmem:[%s1130_s1 + $0x3] ss:$8 sm:$0x3] (!%p163_p2) }
   0x6   : > { %166 = sbr.rel (%p163_p2) target bundleno = 1079 (0x437), region = 36  ;;  %s810_s22 = smov (!%p163_p2), 16   ;;  %488 = vmatprep.mubr.f32.mxu0 (!%p163_p2), %v815_v2  ;;  %647 = vmatprep.mubr.f32.mxu1 (!%p163_p2), %v815_v2  ;;  %v740_v11 = vld [vmem:[%s1130_s1 + $0x1] ss:$8 sm:$0x3] (!%p163_p2)  ;;  %vm405_vm4 = vcmask (!%p163_p2), 1043456  }
   0x7   : > { %s811_s23 = smov (!%p163_p2), 17   ;;  %s812_s24 = smov (!%p163_p2), 15   ;;  %v216_v4 = vshrl.u32 (!%p163_p2), %v208_v3, 7  ;;  %v895_v5 = vand.u32 (!%p163_p2), 127, %v208_v3  ;;  %vm414_vm9 = vcmask (!%p163_p2), 293888   ;;  %vm579_vm10 = vcmask (!%p163_p2), 588800  }
   0x8   : > { %s813_s25 = smov (!%p163_p2), 127   ;;  %s814_s26 = smov (!%p163_p2), 112   ;;  %v213_v16 = vld [vmem:[%s1130_s1] ss:$8 sm:$0x3] (!%p163_p2) }
   0x9   : > { %s816_s27 = smov (!%p163_p2), 113   ;;  %s817_s28 = smov (!%p163_p2), 111   ;;  %v897_v8 = vsub.s32 (!%p163_p2), 0, %v216_v4  ;;  %v899_v9 = vsub.s32 (!%p163_p2), 1, %v216_v4  ;;  %vm275_vm0 = vcmp.lt.s32.totalorder (!%p163_p2), %v895_v5, 1  ;;  %vm231_vm1 = vcmp.lt.s32.totalorder (!%p163_p2), %v895_v5, 16 }
   0xa   : > { %v741_v21 = vld [vmem:[%s1130_s1 + $0x2] ss:$8 sm:$0x3] (!%p163_p2)  ;;  %vm210_vm2 = vcmp.lt.s32.totalorder (!%p163_p2), %v895_v5, 17  ;;  %vm253_vm3 = vcmp.lt.s32.totalorder (!%p163_p2), %v895_v5, 15  ;;  %vm297_vm5 = vcmp.lt.s32.totalorder (!%p163_p2), %v895_v5, 127 }
   0xb   : > { %v909_v14 = vrot.slane (!%p163_p2), %v742_v10, %v897_v8  ;;  %v912_v15 = vrot.slane (!%p163_p2), %v742_v10, %v899_v9  ;;  %v923_v19 = vrot.slane (!%p163_p2), %v740_v11, %v897_v8  ;;  %v926_v20 = vrot.slane (!%p163_p2), %v740_v11, %v899_v9  ;;  %v743_v40 = vld [vmem:[%s1130_s1 + $0x5] ss:$8 sm:$0x3] (!%p163_p2)  ;;  %v745_v51 = vld [vmem:[%s1130_s1 + $0x7] ss:$8 sm:$0x3] (!%p163_p2) }
   0xc   : > { %v933_v22 = vrot.slane (!%p163_p2), %v213_v16, %v897_v8  ;;  %v936_v23 = vrot.slane (!%p163_p2), %v213_v16, %v899_v9  ;;  %v948_v32 = vrot.slane (!%p163_p2), %v741_v21, %v897_v8  ;;  %v951_v33 = vrot.slane (!%p163_p2), %v741_v21, %v899_v9  ;;  %v744_v2 = vld [vmem:[%s1130_s1 + $0x6] ss:$8 sm:$0x3] (!%p163_p2) }
   0xd   : > { %s1135_s16 = smov (!%p188_p3, %s731_s16), 1  ;;  %v970_v49 = vrot.slane %v743_v40, %v897_v8  ;;  %v973_v50 = vrot.slane %v743_v40, %v899_v9  ;;  %vm341_vm6 = vcmp.lt.s32.totalorder %v895_v5, 112  ;;  %v988_v62 = vrot.slane %v745_v51, %v897_v8 }
   0xe   : > { %s753_s17 = sshll.u32 %s1135_s16, 3  ;;  %v991_v63 = vrot.slane %v745_v51, %v899_v9  ;;  %vm319_vm7 = vcmp.lt.s32.totalorder %v895_v5, 113  ;;  %v1006_v16 = vrot.slane %v744_v2, %v897_v8  ;;  %vm363_vm8 = vcmp.lt.s32.totalorder %v895_v5, 111 }
   0xf   : > { %s192_s20 = scalar_lea.vmem %s1129_s0, %s753_s17 }
  0x10   : > { %v857_v0 = vld [vmem:[%s192_s20] sm:$0xff] }
  0x11   : > { %271 = vrot.lane.b32.xlu1 %v857_v0, %s809_s21  ;;  %227 = vrot.lane.b32.xlu0 %v857_v0, %s810_s22  ;;  %v865_v1 = vcombine.high %v857_v0, %v857_v0 }
  0x15   : > { %204 = vrot.lane.b32.xlu0 %v857_v0, %s811_s23  ;;  %273 = vrot.lane.b32.xlu1 %v865_v1, %s809_s21 }
  0x19   : > { %206 = vrot.lane.b32.xlu1 %v865_v1, %s811_s23  ;;  %229 = vrot.lane.b32.xlu0 %v865_v1, %s810_s22 }
  0x1d   : > { %251 = vrot.lane.b32.xlu1 %v865_v1, %s812_s24  ;;  %249 = vrot.lane.b32.xlu0 %v857_v0, %s812_s24 }
  0x21   : > { %295 = vrot.lane.b32.xlu1 %v865_v1, %s813_s25  ;;  %293 = vrot.lane.b32.xlu0 %v857_v0, %s813_s25 }
  0x25   : > { %339 = vrot.lane.b32.xlu1 %v865_v1, %s814_s26  ;;  %337 = vrot.lane.b32.xlu0 %v857_v0, %s814_s26 }
  0x29   : > { %317 = vrot.lane.b32.xlu1 %v865_v1, %s816_s27  ;;  %315 = vrot.lane.b32.xlu0 %v857_v0, %s816_s27 }
  0x2d   : > { %361 = vrot.lane.b32.xlu1 %v865_v1, %s817_s28  ;;  %359 = vrot.lane.b32.xlu0 %v857_v0, %s817_s28 }
  0x83   : > { %v272_v6 = vpop.permute.xlu1 %271  ;;  %v228_v7 = vpop.permute.xlu0 %227 }
  0x87   : > { %v205_v12 = vpop.permute.xlu0 %204  ;;  %v274_v13 = vpop.permute.xlu1 %273 }
  0x88   : > { %v276_v17 = vsel %vm275_vm0, %v272_v6, %v274_v13  ;;  %v277_v18 = vsel %vm275_vm0, %v274_v13, %v272_v6 }
  0x89   : > { %v291_v26 = vmul.f32 %v909_v14, %v277_v18  ;;  %v292_v27 = vmul.f32 %v912_v15, %v276_v17  ;;  %v1009_v17 = vrot.slane %v744_v2, %v899_v9  ;;  %v746_v18 = vld [vmem:[%s1130_s1 + $0x10] ss:$8 sm:$0x3] }
  0x8b   : > { %v207_v24 = vpop.permute.xlu1 %206  ;;  %v230_v25 = vpop.permute.xlu0 %229  ;;  %v389_v41 = vrot.slane %v291_v26, 4  ;;  %v390_v42 = vrot.slane %v292_v27, 4 }
  0x8c   : > { %v232_v28 = vsel %vm231_vm1, %v228_v7, %v230_v25  ;;  %v233_v29 = vsel %vm231_vm1, %v230_v25, %v228_v7  ;;  %v211_v34 = vsel %vm210_vm2, %v205_v12, %v207_v24  ;;  %v212_v35 = vsel %vm210_vm2, %v207_v24, %v205_v12 }
  0x8d   : > { %v247_v30 = vmul.f32 %v923_v19, %v233_v29  ;;  %v248_v31 = vmul.f32 %v926_v20, %v232_v28  ;;  %v225_v45 = vmul.f32 %v933_v22, %v212_v35  ;;  %v226_v46 = vmul.f32 %v936_v23, %v211_v34 }
  0x8e   : > { %v1020_v29 = vrot.slane %v746_v18, %v899_v9 }
  0x8f   : > { %v383_v36 = vrot.slane %v247_v30, 4  ;;  %v384_v37 = vrot.slane %v248_v31, 4  ;;  %v252_v38 = vpop.permute.xlu1 %251  ;;  %v250_v39 = vpop.permute.xlu0 %249 }
  0x90   : > { %v254_v43 = vsel %vm253_vm3, %v250_v39, %v252_v38  ;;  %v255_v44 = vsel %vm253_vm3, %v252_v38, %v250_v39 }
  0x91   : > { %v269_v47 = vmul.f32 %v948_v32, %v255_v44  ;;  %v270_v48 = vmul.f32 %v951_v33, %v254_v43  ;;  %v407_v54 = vsel %vm405_vm4, %v226_v46, %v384_v37  ;;  %v406_v56 = vsel %vm405_vm4, %v225_v45, %v383_v36 }
  0x92   : > { %v1025_v36 = vrot.slane %v746_v18, %v897_v8 }
  0x93   : > { %v296_v52 = vpop.permute.xlu1 %295  ;;  %v294_v53 = vpop.permute.xlu0 %293  ;;  %v409_v55 = vsel %vm405_vm4, %v270_v48, %v390_v42  ;;  %v408_v57 = vsel %vm405_vm4, %v269_v47, %v389_v41 }
  0x94   : > { %v298_v58 = vsel %vm297_vm5, %v294_v53, %v296_v52  ;;  %v299_v59 = vsel %vm297_vm5, %v296_v52, %v294_v53  ;;  %v755_v60 = vpack.c.bf16 %v409_v55, %v407_v54  ;;  %v757_v61 = vpack.c.bf16 %v408_v57, %v406_v56 }
  0x95   : > { %v313_v3 = vmul.f32 %v970_v49, %v298_v58  ;;  %v314_v4 = vmul.f32 %v973_v50, %v299_v59 }
  0x96   : > { %756 = vmatprep.subr.bf16.mxu0 %v755_v60 }
  0x97   : > { %v340_v6 = vpop.permute.xlu1 %339  ;;  %758 = vmatpush1.bf16.msra.mxu0 %v757_v61  ;;  %v338_v7 = vpop.permute.xlu0 %337  ;;  %v395_v21 = vrot.slane %v313_v3, 4  ;;  %v396_v24 = vrot.slane %v314_v4, 4 }
  0x98   : > { %v342_v10 = vsel %vm341_vm6, %v338_v7, %v340_v6  ;;  %v343_v11 = vsel %vm341_vm6, %v340_v6, %v338_v7 }
  0x99   : > { %v357_v12 = vmul.f32 %v988_v62, %v342_v10  ;;  %v358_v13 = vmul.f32 %v991_v63, %v343_v11  ;;  %v411_v38 = vsel %vm405_vm4, %v865_v1, %v396_v24  ;;  %v410_v9 = vsel %vm405_vm4, %v857_v0, %v395_v21  ;;  %v198_v0 = vld [vmem:[%s1131_s2] sm:$0xff] }
  0x9b   : > { %v318_v25 = vpop.permute.xlu1 %317  ;;  %v316_v26 = vpop.permute.xlu0 %315  ;;  %v401_v30 = vrot.slane %v357_v12, 4  ;;  %v402_v31 = vrot.slane %v358_v13, 4 }
  0x9c   : > { %v320_v27 = vsel %vm319_vm7, %v316_v26, %v318_v25  ;;  %v321_v28 = vsel %vm319_vm7, %v318_v25, %v316_v26 }
  0x9d   : > { %v335_v34 = vmul.f32 %v1006_v16, %v320_v27  ;;  %v336_v35 = vmul.f32 %v1009_v17, %v321_v28 }
  0x9f   : > { %v362_v37 = vpop.permute.xlu1 %361  ;;  %v413_v39 = vsel %vm405_vm4, %v336_v35, %v402_v31  ;;  %v360_v40 = vpop.permute.xlu0 %359  ;;  %v412_v41 = vsel %vm405_vm4, %v335_v34, %v401_v30 }
  0xa0   : > { %v759_v42 = vpack.c.bf16 %v413_v39, %v411_v38  ;;  %v364_v43 = vsel %vm363_vm8, %v360_v40, %v362_v37  ;;  %v365_v8 = vsel %vm363_vm8, %v362_v37, %v360_v40  ;;  %v761_v44 = vpack.c.bf16 %v412_v41, %v410_v9 }
  0xa1   : > { %v380_v45 = vmul.f32 %v1020_v29, %v365_v8  ;;  %v379_v1 = vmul.f32 %v1025_v36, %v364_v43 }
  0xa2   : > { %760 = vmatprep.subr.bf16.mxu0 %v759_v42 }
  0xa3   : > { %762 = vmatpush1.bf16.msra.mxu0 %v761_v44 }
  0xa4   : > { %747 = vmatprep.subr.msk.mxu0 %vm405_vm4, %v380_v45 }
  0xa7   : > { %748 = vmatpush1.msk.msra.mxu0 %vm405_vm4, %v379_v1 }
  0xa8   : > { %749 = vmatmul.mubr.msk.f32.vlgmr.msra.gmra.mrb[0].mxu0 %vm414_vm9, %v198_v0 }
 0x17b   : > { %v490_v46 = vpop.f32.mrb[0].mxu0 }
 0x17c   : > { %v492_v47 = vpop.f32.mrb[1].mxu0  ;;  %v498_v48 = vmul.f32 %v490_v46, %v490_v46 }
 0x17d   : > { %v499_v51 = vmul.f32 %v492_v47, %v492_v47  ;;  %v495_v52 = vadd.f32 %v492_v47, %v490_v46 }
 0x17f   : > { %496 = vadd.xlane.f32.xlu0 %v495_v52  ;;  %v500_v53 = vadd.f32 %v499_v51, %v498_v48 }
 0x181   : > { %501 = vadd.xlane.f32.xlu1 %v500_v53 }
 0x20c   : > { %v497_v54 = vpop.xlane.xlu0 %496 }
 0x20d   : > { %v503_v55 = vmul.f32 0.00390625, %v497_v54 }
 0x20e   : > { %v502_v56 = vpop.xlane.xlu1 %501 }
 0x20f   : > { %v504_v57 = vmul.f32 0.00390625, %v502_v56  ;;  %v505_v58 = vmul.f32 %v503_v55, %v503_v55  ;;  %v507_v61 = vsub.f32 %v490_v46, %v503_v55  ;;  %v508_v2 = vsub.f32 %v492_v47, %v503_v55 }
 0x211   : > { %v506_v59 = vsub.f32 %v504_v57, %v505_v58 }
 0x213   : > { %v509_v60 = vadd.f32 1e-05, %v506_v59 }
 0x215   : > { %797 = vrsqrt.f32 %v509_v60 }
 0x21f   : > { %v798_v3 = vpop.eup %797 }
 0x220   : > { %v511_v4 = vmul.f32 %v798_v3, %v507_v61  ;;  %v512_v6 = vmul.f32 %v798_v3, %v508_v2 }
 0x222   : > { %v1044_v7 = vmax.f32 %v511_v4, 0.0  ;;  %v514_v10 = vmax.f32 %v512_v6, 0.0 }
 0x224   : > { %517 = vrot.lane.b32.xlu1 %v514_v10, %s811_s23  ;;  %515 = vrot.lane.b32.xlu0 %v1044_v7, %s811_s23  ;;  %s754_s23 = sshll.u32 %s1135_s16, 4 }
 0x228   : > { %525 = vrot.lane.b32.xlu1 %v514_v10, %s810_s22  ;;  %523 = vrot.lane.b32.xlu0 %v1044_v7, %s810_s22 }
 0x22c   : > { %533 = vrot.lane.b32.xlu1 %v514_v10, %s812_s24  ;;  %531 = vrot.lane.b32.xlu0 %v1044_v7, %s812_s24 }
 0x230   : > { %541 = vrot.lane.b32.xlu1 %v514_v10, %s809_s21  ;;  %539 = vrot.lane.b32.xlu0 %v1044_v7, %s809_s21 }
 0x234   : > { %549 = vrot.lane.b32.xlu1 %v514_v10, %s813_s25  ;;  %547 = vrot.lane.b32.xlu0 %v1044_v7, %s813_s25 }
 0x238   : > { %557 = vrot.lane.b32.xlu1 %v514_v10, %s816_s27  ;;  %555 = vrot.lane.b32.xlu0 %v1044_v7, %s816_s27 }
 0x23c   : > { %565 = vrot.lane.b32.xlu1 %v514_v10, %s814_s26  ;;  %563 = vrot.lane.b32.xlu0 %v1044_v7, %s814_s26  ;;  %s197_s26 = scalar_lea.vmem %s1133_s4, %s754_s23 }
 0x240   : > { %573 = vrot.lane.b32.xlu1 %v514_v10, %s817_s28  ;;  %571 = vrot.lane.b32.xlu0 %v1044_v7, %s817_s28 }
 0x296   : > { %v518_v11 = vpop.permute.xlu1 %517  ;;  %v516_v12 = vpop.permute.xlu0 %515 }
 0x297   : > { %v519_v13 = vsel %vm210_vm2, %v516_v12, %v518_v11  ;;  %v520_v18 = vsel %vm210_vm2, %v518_v11, %v516_v12 }
 0x298   : > { %v521_v27 = vmul.f32 %v520_v18, %v933_v22  ;;  %v522_v30 = vmul.f32 %v519_v13, %v936_v23 }
 0x29a   : > { %v526_v21 = vpop.permute.xlu1 %525  ;;  %v524_v24 = vpop.permute.xlu0 %523 }
 0x29b   : > { %v527_v25 = vsel %vm231_vm1, %v524_v24, %v526_v21  ;;  %v528_v26 = vsel %vm231_vm1, %v526_v21, %v524_v24 }
 0x29c   : > { %v529_v28 = vmul.f32 %v528_v26, %v923_v19  ;;  %v530_v31 = vmul.f32 %v527_v25, %v926_v20 }
 0x29e   : > { %v534_v34 = vpop.permute.xlu1 %533  ;;  %v532_v35 = vpop.permute.xlu0 %531  ;;  %v763_v37 = vpack.c.bf16 %v530_v31, %v522_v30  ;;  %v765_v38 = vpack.c.bf16 %v529_v28, %v521_v27 }
 0x29f   : > { %v535_v39 = vsel %vm253_vm3, %v532_v35, %v534_v34  ;;  %v536_v40 = vsel %vm253_vm3, %v534_v34, %v532_v35 }
 0x2a0   : > { %764 = vmatprep.subr.bf16.mxu1 %v763_v37  ;;  %v537_v23 = vmul.f32 %v536_v40, %v948_v32  ;;  %v538_v41 = vmul.f32 %v535_v39, %v951_v33 }
 0x2a1   : > { %766 = vmatpush1.bf16.msra.mxu1 %v765_v38 }
 0x2a2   : > { %v542_v9 = vpop.permute.xlu1 %541  ;;  %v540_v22 = vpop.permute.xlu0 %539 }
 0x2a3   : > { %v543_v19 = vsel %vm275_vm0, %v540_v22, %v542_v9  ;;  %v544_v20 = vsel %vm275_vm0, %v542_v9, %v540_v22 }
 0x2a4   : > { %v545_v42 = vmul.f32 %v544_v20, %v909_v14  ;;  %v546_v43 = vmul.f32 %v543_v19, %v912_v15 }
 0x2a6   : > { %v550_v8 = vpop.permute.xlu1 %549  ;;  %v548_v44 = vpop.permute.xlu0 %547  ;;  %v767_v45 = vpack.c.bf16 %v546_v43, %v538_v41  ;;  %v769_v1 = vpack.c.bf16 %v545_v42, %v537_v23 }
 0x2a7   : > { %v551_v0 = vsel %vm297_vm5, %v548_v44, %v550_v8  ;;  %v552_v46 = vsel %vm297_vm5, %v550_v8, %v548_v44 }
 0x2a8   : > { %v553_v47 = vmul.f32 %v551_v0, %v970_v49  ;;  %v554_v32 = vmul.f32 %v552_v46, %v973_v50  ;;  %768 = vmatprep.subr.bf16.mxu1 %v767_v45 }
 0x2a9   : > { %770 = vmatpush1.bf16.msra.mxu1 %v769_v1 }
 0x2aa   : > { %v558_v33 = vpop.permute.xlu1 %557  ;;  %v556_v14 = vpop.permute.xlu0 %555  ;;  %v771_v48 = vpack.c.bf16 %v554_v32, %v514_v10  ;;  %v773_v15 = vpack.c.bf16 %v553_v47, %v1044_v7 }
 0x2ab   : > { %v559_v51 = vsel %vm319_vm7, %v556_v14, %v558_v33  ;;  %v560_v52 = vsel %vm319_vm7, %v558_v33, %v556_v14 }
 0x2ac   : > { %772 = vmatprep.subr.bf16.mxu1 %v771_v48  ;;  %v561_v55 = vmul.f32 %v559_v51, %v1006_v16  ;;  %v562_v56 = vmul.f32 %v560_v52, %v1009_v17 }
 0x2ad   : > { %774 = vmatpush1.bf16.msra.mxu1 %v773_v15 }
 0x2ae   : > { %v566_v53 = vpop.permute.xlu1 %565  ;;  %v564_v54 = vpop.permute.xlu0 %563 }
 0x2af   : > { %v567_v49 = vsel %vm341_vm6, %v564_v54, %v566_v53  ;;  %v568_v50 = vsel %vm341_vm6, %v566_v53, %v564_v54 }
 0x2b0   : > { %v569_v57 = vmul.f32 %v567_v49, %v988_v62  ;;  %v570_v58 = vmul.f32 %v568_v50, %v991_v63  ;;  %v199_v62 = vld [vmem:[%s1132_s3] sm:$0xff] }
 0x2b2   : > { %v574_v59 = vpop.permute.xlu1 %573  ;;  %v572_v60 = vpop.permute.xlu0 %571  ;;  %v775_v61 = vpack.c.bf16 %v570_v58, %v562_v56  ;;  %v777_v2 = vpack.c.bf16 %v569_v57, %v561_v55 }
 0x2b3   : > { %v576_v3 = vsel %vm363_vm8, %v574_v59, %v572_v60  ;;  %v575_v4 = vsel %vm363_vm8, %v572_v60, %v574_v59 }
 0x2b4   : > { %v578_v6 = vmul.f32 %v576_v3, %v1020_v29  ;;  %776 = vmatprep.subr.bf16.mxu1 %v775_v61  ;;  %v577_v16 = vmul.f32 %v575_v4, %v1025_v36 }
 0x2b5   : > { %778 = vmatpush1.bf16.msra.mxu1 %v777_v2 }
 0x2b6   : > { %599 = vmatprep.subr.mxu1 %v578_v6 }
 0x2b9   : > { %600 = vmatpush1.msra.mxu1 %v577_v16 }
 0x2ba   : > { %750 = vmatmul.mubr.msk.f32.vlgmr.msra.gmra.mrb[0].mxu1 %vm579_vm10, %v199_v62 }
 0x38d   : > { %v649_v63 = vpop.f32.mrb[0].mxu1 }
 0x38e   : > { %v651_v17 = vpop.f32.mrb[1].mxu1  ;;  %v657_v7 = vmul.f32 %v649_v63, %v649_v63 }
 0x38f   : > { %v658_v5 = vmul.f32 %v651_v17, %v651_v17  ;;  %v654_v10 = vadd.f32 %v651_v17, %v649_v63 }
 0x391   : > { %655 = vadd.xlane.f32.xlu0 %v654_v10  ;;  %v659_v29 = vadd.f32 %v658_v5, %v657_v7 }
 0x393   : > { %660 = vadd.xlane.f32.xlu1 %v659_v29 }
 0x41e   : > { %v656_v11 = vpop.xlane.xlu0 %655 }
 0x41f   : > { %v662_v12 = vmul.f32 0.00390625, %v656_v11 }
 0x420   : > { %v661_v13 = vpop.xlane.xlu1 %660 }
 0x421   : > { %v663_v36 = vmul.f32 0.00390625, %v661_v13  ;;  %v664_v18 = vmul.f32 %v662_v12, %v662_v12  ;;  %v666_v25 = vsub.f32 %v649_v63, %v662_v12  ;;  %v667_v26 = vsub.f32 %v651_v17, %v662_v12 }
 0x423   : > { %v665_v21 = vsub.f32 %v663_v36, %v664_v18 }
 0x425   : > { %v668_v24 = vadd.f32 1e-05, %v665_v21 }
 0x427   : > { %799 = vrsqrt.f32 %v668_v24 }
 0x431   : > { %v800_v27 = vpop.eup %799 }
 0x432   : > { %v670_v28 = vmul.f32 %v800_v27, %v666_v25  ;;  %v671_v30 = vmul.f32 %v800_v27, %v667_v26 }
 0x434   : > { %v672_v31 = vmax.f32 %v670_v28, 0.0  ;;  %v673_v34 = vmax.f32 %v671_v30, 0.0 }
 0x436   : > { %674 = vst [vmem:[%s197_s26] sm:$0xff] %v672_v31  ;;  %675 = vst [vmem:[%s197_s26 + $0x8] sm:$0xff] %v673_v34 }
 0x437 PF: > { %s14_s15 = sadd.s32 1, %s807_s15  }
 0x438   : > { %p11_p4 = scmp.ge.s32.totalorder %s14_s15, 4  }
 0x43a   :  { %13 = sbr.rel (!%p11_p4) target bundleno = 1 (0x1), region = 73 }

</bundles_post_ra>
